<compile_context>
chip_gen: v6e
topology: v6e:2x2x1
jax: 0.10.0
libtpu: 0.0.40
codegen_flags: <defaults>
</compile_context>

<pallas_src>
import functools

import jax
import jax.numpy as jnp
from jax import lax
from jax.experimental import pallas as pl
from jax.experimental.pallas import tpu as pltpu


def _linear_attention_kernel(x_ref, wqkv_ref, wout_ref, mask_ref, bg_ref, o_ref,
                             *, heads, dim_head, eps):
    # x block: (1, C, N) -> (C, N): channels on sublanes, tokens on lanes (N lane-dense).
    x = x_ref[0]
    hidden = heads * dim_head
    n = x.shape[-1]
    bf16 = jnp.bfloat16

    # ---- to_qkv: 1x1 conv == (3*hidden, C) @ (C, N).  Weights arrive pre-cast to bf16
    # (constant across the grid); f32 accumulation on the MXU.
    qkv = jnp.dot(wqkv_ref[...], x.astype(bf16),
                  preferred_element_type=jnp.float32)            # (3*hidden, N) f32
    q = qkv[0 * hidden:1 * hidden, :]                            # (hidden, N), row = h*Dh + d
    k = qkv[1 * hidden:2 * hidden, :]
    v = qkv[2 * hidden:3 * hidden, :]

    # ---- k softmax over tokens (torch dim=-1): lane-direction reduction over dense N.
    # EUP approx reciprocal instead of a VPU divide (co-issues with MXU/VPU/XLU work).
    k = k - jnp.max(k, axis=-1, keepdims=True)
    ek = jnp.exp(k)
    k_sm = ek * pl.reciprocal(jnp.sum(ek, axis=-1, keepdims=True), approx=True)

    # ---- q softmax over d within each head (torch dim=-2), segmented on sublanes.
    # (hidden, N) -> (heads, dim_head, N) is layout-free (dim_head == 8 == f32 sublane
    # tile).  Per-head max keeps every head's exp() well-scaled (no cross-head underflow),
    # per-head sums are XLU sublane reductions — no f32 MXU matmul for the denominators.
    # `scale` is folded into the masked context below, not multiplied into (hidden, N).
    q_h = q.reshape(heads, dim_head, n)
    q_h = q_h - jnp.max(q_h, axis=1, keepdims=True)
    eq = jnp.exp(q_h)
    q_sm = (eq * pl.reciprocal(jnp.sum(eq, axis=1, keepdims=True), approx=True)
            ).reshape(hidden, n)                                 # (hidden, N) f32

    # ---- context[d, e] = sum_n k_sm[d, n] * v[e, n]   -> (hidden, hidden), then mask to
    # block-diagonal per head with `scale` pre-folded (precomputed wrapper constant).
    context = lax.dot_general(k_sm.astype(bf16), v.astype(bf16),
                              (((1,), (1,)), ((), ())),
                              preferred_element_type=jnp.float32)
    context = context * mask_ref[...]                            # (head_mask * scale), f32

    # ---- Fused to_out 1x1 conv:
    #   m[c, d] = sum_e w_out[c, e] * context[d, e]   (C, hidden)  — tiny matmul
    #   y[c, n] = sum_d m[c, d] * q_sm[d, n] + b[c]   (C, N)
    # One fewer (hidden, N) MXU pass + f32 intermediate than ctx^T @ q_sm then w_out @ out.
    m = lax.dot_general(wout_ref[...], context.astype(bf16),
                        (((1,), (1,)), ((), ())),
                        preferred_element_type=jnp.float32)      # (C, hidden) f32
    bg = bg_ref[...]                                             # (C, 2): [:,0]=bias, [:,1]=gain
    y = jnp.dot(m.astype(bf16), q_sm.astype(bf16),
                preferred_element_type=jnp.float32) + bg[:, 0:1] # (C, N) f32

    # ---- to_out[1]: LayerNorm over the channel (sublane) axis, biased var, gain g.
    mean = jnp.mean(y, axis=0, keepdims=True)
    var = jnp.mean((y - mean) * (y - mean), axis=0, keepdims=True)
    o_ref[0] = ((y - mean) * lax.rsqrt(var + eps) * bg[:, 1:2]).astype(o_ref.dtype)


def linear_attention(x_nchw, w_qkv, w_out, b_out, g, *, heads, dim_head):
    """x_nchw: (B, C, H, W).  w_qkv: (3*hidden, C), w_out: (C, hidden) (PyTorch 1x1-conv
    weight layout, kernel dims squeezed), b_out: (C,), g: (C,).  Returns (B, C, H, W)."""
    b, c, h, w = x_nchw.shape
    n = h * w
    hidden = heads * dim_head
    scale = dim_head ** (-0.5)
    eps = 1e-5 if x_nchw.dtype == jnp.float32 else 1e-3

    # Free layout glue: NCHW is already channels-by-tokens per batch — no transpose.
    x_cn = x_nchw.reshape(b, c, n)

    # Grid-constant inputs, prepared once in the wrapper:
    #  - weights pre-cast to bf16 (no per-step in-kernel casts, half-size weight DMAs),
    #  - block-diagonal head mask with `scale` folded in (no per-step iota rebuild),
    #  - bias and LayerNorm gain merged into a single tiny (C, 2) block.
    w_qkv_bf = w_qkv.astype(jnp.bfloat16)                               # (3*hidden, C)
    w_out_bf = w_out.astype(jnp.bfloat16)                               # (C, hidden)
    head_of = jnp.arange(hidden, dtype=jnp.int32) // dim_head
    mask_scale = (head_of[:, None] == head_of[None, :]).astype(jnp.float32) * scale
    bg = jnp.stack([b_out, g], axis=1).astype(jnp.float32)              # (C, 2)

    kernel = functools.partial(
        _linear_attention_kernel, heads=heads, dim_head=dim_head, eps=eps)

    out_cn = pl.pallas_call(
        kernel,
        out_shape=jax.ShapeDtypeStruct((b, c, n), x_nchw.dtype),
        grid_spec=pltpu.PrefetchScalarGridSpec(
            num_scalar_prefetch=0,
            grid=(b,),
            in_specs=[
                pl.BlockSpec((1, c, n), lambda i: (i, 0, 0)),            # x, lane-dense N
                pl.BlockSpec((3 * hidden, c), lambda i: (0, 0)),         # w_qkv (bf16, full)
                pl.BlockSpec((c, hidden), lambda i: (0, 0)),             # w_out (bf16, full)
                pl.BlockSpec((hidden, hidden), lambda i: (0, 0)),        # head_mask * scale
                pl.BlockSpec((c, 2), lambda i: (0, 0)),                  # [bias, gain]
            ],
            out_specs=pl.BlockSpec((1, c, n), lambda i: (i, 0, 0)),      # lane-dense store
        ),
        compiler_params=pltpu.CompilerParams(
            # Batch axis shardable across the 2 TensorCores on v7x; harmless on v5e/v6e.
            dimension_semantics=("parallel",)),
    )(x_cn, w_qkv_bf, w_out_bf, mask_scale, bg)

    return out_cn.reshape(b, c, h, w)


def _reference(x_nchw, w_qkv, w_out, b_out, g, *, heads, dim_head,
               matmul_dtype=jnp.float32):
    """Pure-JAX reference mirroring the PyTorch forward.  matmul_dtype=f32 gives exact
    PyTorch semantics; matmul_dtype=bf16 applies the same cast-at-the-matmul policy the
    kernel uses (f32 accumulation) for a tighter apples-to-apples check."""
    b, c, hh, ww = x_nchw.shape
    n = hh * ww
    hidden = heads * dim_head
    scale = dim_head ** (-0.5)
    eps = 1e-5 if x_nchw.dtype == jnp.float32 else 1e-3
    cast = lambda t: t.astype(matmul_dtype)

    def one_batch(x_cn):                                          # (C, N)
        qkv = jnp.dot(cast(w_qkv), cast(x_cn),
                      preferred_element_type=jnp.float32)         # (3*hidden, N)
        q, k, v = jnp.split(qkv, 3, axis=0)
        to_hdn = lambda t: t.reshape(heads, dim_head, n)
        q, k, v = map(to_hdn, (q, k, v))
        q = jax.nn.softmax(q, axis=-2) * scale                    # over d (per head)
        k = jax.nn.softmax(k, axis=-1)                            # over n
        context = jnp.einsum('hdn,hen->hde', cast(k), cast(v),
                             preferred_element_type=jnp.float32)
        out = jnp.einsum('hde,hdn->hen', cast(context), cast(q),
                         preferred_element_type=jnp.float32)
        out = out.reshape(hidden, n)                              # 'b (h c) x y'
        y = jnp.dot(cast(w_out), cast(out),
                    preferred_element_type=jnp.float32) + b_out[:, None]
        mean = jnp.mean(y, axis=0, keepdims=True)
        var = jnp.mean((y - mean) ** 2, axis=0, keepdims=True)
        return (y - mean) * lax.rsqrt(var + eps) * g[:, None]

    y = jax.vmap(one_batch)(x_nchw.reshape(b, c, n))
    return y.reshape(b, c, hh, ww)


if __name__ == "__main__":
    B, DIM, H, W = 2, 32, 16, 16
    HEADS = 4
    DIM_HEAD = DIM // HEADS          # 8
    HIDDEN = HEADS * DIM_HEAD        # 32

    key = jax.random.PRNGKey(0)
    kx, k1, k2, k3 = jax.random.split(key, 4)

    x = jax.random.normal(kx, (B, DIM, H, W), dtype=jnp.float32)
    # Conv2d 1x1 weights in native PyTorch (out_ch, in_ch) layout.
    w_qkv = jax.random.normal(k1, (3 * HIDDEN, DIM), dtype=jnp.float32) * 0.1  # to_qkv (no bias)
    w_out = jax.random.normal(k2, (DIM, HIDDEN), dtype=jnp.float32) * 0.1      # to_out conv weight
    b_out = jax.random.normal(k3, (DIM,), dtype=jnp.float32) * 0.1             # to_out conv bias
    g = jnp.ones((DIM,), dtype=jnp.float32)                                    # LayerNorm gain

    y = jax.block_until_ready(
        linear_attention(x, w_qkv, w_out, b_out, g, heads=HEADS, dim_head=DIM_HEAD))
    assert y.shape == (B, DIM, H, W)

    # Tight-ish check vs a reference using the same bf16 cast-at-the-matmul policy
    # (residual differences: matmul reassociation of the fused projection + approx recip).
    y_bf16 = _reference(x, w_qkv, w_out, b_out, g, heads=HEADS, dim_head=DIM_HEAD,
                        matmul_dtype=jnp.bfloat16)
    assert jnp.allclose(y, y_bf16, atol=2e-2, rtol=2e-2), "mismatch vs bf16-matched reference"

    # Loose check vs exact f32 PyTorch semantics (difference = bf16 MXU operand rounding).
    y_f32 = _reference(x, w_qkv, w_out, b_out, g, heads=HEADS, dim_head=DIM_HEAD,
                       matmul_dtype=jnp.float32)
    assert jnp.allclose(y, y_f32, atol=6e-2, rtol=6e-2), "mismatch vs f32 reference"

    print("KERNEL_OK")
</pallas_src>

<mosaic_0001>
module attributes {stable_mosaic.version = 11 : i64} {
  func.func @_linear_attention_kernel(%arg0: i32, %arg1: memref<1x32x256xf32, #tpu.memory_space<vmem>>, %arg2: memref<96x32xbf16, #tpu.memory_space<vmem>>, %arg3: memref<32x32xbf16, #tpu.memory_space<vmem>>, %arg4: memref<32x32xf32, #tpu.memory_space<vmem>>, %arg5: memref<32x2xf32, #tpu.memory_space<vmem>>, %arg6: memref<1x32x256xf32, #tpu.memory_space<vmem>>) attributes {dimension_semantics = [#tpu.dimension_semantics<parallel>], iteration_bounds = array<i64: 2>, scalar_prefetch = 0 : i64, scratch_operands = 0 : i64, tpu.core_type = #tpu.core_type<tc>, window_params = [{transform_indices = @transform_0, window_bounds = array<i64: 1, 32, 256>}, {pipeline_mode = #tpu.pipeline_mode<synchronous>, transform_indices = @transform_1, window_bounds = array<i64: 96, 32>}, {pipeline_mode = #tpu.pipeline_mode<synchronous>, transform_indices = @transform_2, window_bounds = array<i64: 32, 32>}, {pipeline_mode = #tpu.pipeline_mode<synchronous>, transform_indices = @transform_3, window_bounds = array<i64: 32, 32>}, {pipeline_mode = #tpu.pipeline_mode<synchronous>, transform_indices = @transform_4, window_bounds = array<i64: 32, 2>}, {transform_indices = @transform_5, window_bounds = array<i64: 1, 32, 256>}]} {
    %c0 = arith.constant 0 : index
    %c0_0 = arith.constant 0 : index
    %c0_1 = arith.constant 0 : index
    %0 = vector.load %arg1[%c0, %c0_0, %c0_1] : memref<1x32x256xf32, #tpu.memory_space<vmem>>, vector<1x32x256xf32>
    %1 = vector.shape_cast %0 : vector<1x32x256xf32> to vector<32x256xf32>
    %c0_2 = arith.constant 0 : index
    %c0_3 = arith.constant 0 : index
    %2 = vector.load %arg2[%c0_2, %c0_3] : memref<96x32xbf16, #tpu.memory_space<vmem>>, vector<96x32xbf16>
    %3 = arith.truncf %1 : vector<32x256xf32> to vector<32x256xbf16>
    %cst = arith.constant dense<0.000000e+00> : vector<96x256xf32>
    %4 = tpu.matmul %2, %3, %cst {dimension_numbers = #tpu.dot_dimension_numbers<[1], [0], [0], [1], [0, 0, 1, 1], [], []>} : vector<96x32xbf16>, vector<32x256xbf16>, vector<96x256xf32> -> vector<96x256xf32>
    %5 = vector.extract_strided_slice %4 {offsets = [0, 0], sizes = [32, 256], strides = [1, 1]} : vector<96x256xf32> to vector<32x256xf32>
    %6 = vector.extract_strided_slice %4 {offsets = [32, 0], sizes = [32, 256], strides = [1, 1]} : vector<96x256xf32> to vector<32x256xf32>
    %7 = vector.extract_strided_slice %4 {offsets = [64, 0], sizes = [32, 256], strides = [1, 1]} : vector<96x256xf32> to vector<32x256xf32>
    %cst_4 = arith.constant dense<0xFF800000> : vector<32xf32>
    %8 = vector.multi_reduction <maximumf>, %6, %cst_4 [1] : vector<32x256xf32> to vector<32xf32>
    %9 = vector.shape_cast %8 : vector<32xf32> to vector<32x1xf32>
    %10 = vector.broadcast %9 : vector<32x1xf32> to vector<32x256xf32>
    %11 = arith.subf %6, %10 : vector<32x256xf32>
    %12 = math.exp %11 : vector<32x256xf32>
    %cst_5 = arith.constant dense<0.000000e+00> : vector<32xf32>
    %13 = vector.multi_reduction <add>, %12, %cst_5 [1] : vector<32x256xf32> to vector<32xf32>
    %14 = vector.shape_cast %13 : vector<32xf32> to vector<32x1xf32>
    %15 = tpu.reciprocal %14 {approx = true} : vector<32x1xf32> -> vector<32x1xf32>
    %16 = vector.broadcast %15 : vector<32x1xf32> to vector<32x256xf32>
    %17 = arith.mulf %12, %16 : vector<32x256xf32>
    %18 = vector.shape_cast %5 : vector<32x256xf32> to vector<4x8x256xf32>
    %cst_6 = arith.constant dense<0xFF800000> : vector<4x256xf32>
    %19 = vector.multi_reduction <maximumf>, %18, %cst_6 [1] : vector<4x8x256xf32> to vector<4x256xf32>
    %20 = vector.shape_cast %19 : vector<4x256xf32> to vector<4x1x256xf32>
    %21 = vector.broadcast %20 : vector<4x1x256xf32> to vector<4x8x256xf32>
    %22 = arith.subf %18, %21 : vector<4x8x256xf32>
    %23 = math.exp %22 : vector<4x8x256xf32>
    %cst_7 = arith.constant dense<0.000000e+00> : vector<4x256xf32>
    %24 = vector.multi_reduction <add>, %23, %cst_7 [1] : vector<4x8x256xf32> to vector<4x256xf32>
    %25 = vector.shape_cast %24 : vector<4x256xf32> to vector<4x1x256xf32>
    %26 = tpu.reciprocal %25 {approx = true} : vector<4x1x256xf32> -> vector<4x1x256xf32>
    %27 = vector.broadcast %26 : vector<4x1x256xf32> to vector<4x8x256xf32>
    %28 = arith.mulf %23, %27 : vector<4x8x256xf32>
    %29 = vector.shape_cast %28 : vector<4x8x256xf32> to vector<32x256xf32>
    %30 = arith.truncf %17 : vector<32x256xf32> to vector<32x256xbf16>
    %31 = arith.truncf %7 : vector<32x256xf32> to vector<32x256xbf16>
    %cst_8 = arith.constant dense<0.000000e+00> : vector<32x32xf32>
    %32 = tpu.matmul %30, %31, %cst_8 {dimension_numbers = #tpu.dot_dimension_numbers<[1], [1], [0], [0], [0, 0, 1, 0], [], []>} : vector<32x256xbf16>, vector<32x256xbf16>, vector<32x32xf32> -> vector<32x32xf32>
    %c0_9 = arith.constant 0 : index
    %c0_10 = arith.constant 0 : index
    %33 = vector.load %arg4[%c0_9, %c0_10] : memref<32x32xf32, #tpu.memory_space<vmem>>, vector<32x32xf32>
    %34 = arith.mulf %32, %33 : vector<32x32xf32>
    %c0_11 = arith.constant 0 : index
    %c0_12 = arith.constant 0 : index
    %35 = vector.load %arg3[%c0_11, %c0_12] : memref<32x32xbf16, #tpu.memory_space<vmem>>, vector<32x32xbf16>
    %36 = arith.truncf %34 : vector<32x32xf32> to vector<32x32xbf16>
    %cst_13 = arith.constant dense<0.000000e+00> : vector<32x32xf32>
    %37 = tpu.matmul %35, %36, %cst_13 {dimension_numbers = #tpu.dot_dimension_numbers<[1], [1], [0], [0], [0, 0, 1, 0], [], []>} : vector<32x32xbf16>, vector<32x32xbf16>, vector<32x32xf32> -> vector<32x32xf32>
    %c0_14 = arith.constant 0 : index
    %c0_15 = arith.constant 0 : index
    %38 = vector.load %arg5[%c0_14, %c0_15] : memref<32x2xf32, #tpu.memory_space<vmem>>, vector<32x2xf32>
    %39 = arith.truncf %37 : vector<32x32xf32> to vector<32x32xbf16>
    %40 = arith.truncf %29 : vector<32x256xf32> to vector<32x256xbf16>
    %cst_16 = arith.constant dense<0.000000e+00> : vector<32x256xf32>
    %41 = tpu.matmul %39, %40, %cst_16 {dimension_numbers = #tpu.dot_dimension_numbers<[1], [0], [0], [1], [0, 0, 1, 1], [], []>} : vector<32x32xbf16>, vector<32x256xbf16>, vector<32x256xf32> -> vector<32x256xf32>
    %42 = vector.extract_strided_slice %38 {offsets = [0, 0], sizes = [32, 1], strides = [1, 1]} : vector<32x2xf32> to vector<32x1xf32>
    %43 = vector.broadcast %42 : vector<32x1xf32> to vector<32x256xf32>
    %44 = arith.addf %41, %43 : vector<32x256xf32>
    %cst_17 = arith.constant dense<0.000000e+00> : vector<256xf32>
    %45 = vector.multi_reduction <add>, %44, %cst_17 [0] : vector<32x256xf32> to vector<256xf32>
    %46 = vector.shape_cast %45 : vector<256xf32> to vector<1x256xf32>
    %cst_18 = arith.constant 3.200000e+01 : f32
    %47 = vector.broadcast %cst_18 : f32 to vector<1x256xf32>
    %48 = arith.divf %46, %47 : vector<1x256xf32>
    %49 = vector.broadcast %48 : vector<1x256xf32> to vector<32x256xf32>
    %50 = arith.subf %44, %49 : vector<32x256xf32>
    %51 = vector.broadcast %48 : vector<1x256xf32> to vector<32x256xf32>
    %52 = arith.subf %44, %51 : vector<32x256xf32>
    %53 = arith.mulf %50, %52 : vector<32x256xf32>
    %cst_19 = arith.constant dense<0.000000e+00> : vector<256xf32>
    %54 = vector.multi_reduction <add>, %53, %cst_19 [0] : vector<32x256xf32> to vector<256xf32>
    %55 = vector.shape_cast %54 : vector<256xf32> to vector<1x256xf32>
    %cst_20 = arith.constant 3.200000e+01 : f32
    %56 = vector.broadcast %cst_20 : f32 to vector<1x256xf32>
    %57 = arith.divf %55, %56 : vector<1x256xf32>
    %58 = vector.broadcast %48 : vector<1x256xf32> to vector<32x256xf32>
    %59 = arith.subf %44, %58 : vector<32x256xf32>
    %cst_21 = arith.constant 9.99999974E-6 : f32
    %60 = vector.broadcast %cst_21 : f32 to vector<1x256xf32>
    %61 = arith.addf %57, %60 : vector<1x256xf32>
    %62 = math.rsqrt %61 : vector<1x256xf32>
    %63 = vector.broadcast %62 : vector<1x256xf32> to vector<32x256xf32>
    %64 = arith.mulf %59, %63 : vector<32x256xf32>
    %65 = vector.extract_strided_slice %38 {offsets = [0, 1], sizes = [32, 1], strides = [1, 1]} : vector<32x2xf32> to vector<32x1xf32>
    %66 = vector.broadcast %65 : vector<32x1xf32> to vector<32x256xf32>
    %67 = arith.mulf %64, %66 : vector<32x256xf32>
    %c0_22 = arith.constant 0 : index
    %c0_23 = arith.constant 0 : index
    %c0_24 = arith.constant 0 : index
    %68 = vector.load %arg6[%c0_22, %c0_23, %c0_24] : memref<1x32x256xf32, #tpu.memory_space<vmem>>, vector<1x32x256xf32>
    %69 = vector.shape_cast %68 : vector<1x32x256xf32> to vector<32x256xf32>
    %70 = vector.shape_cast %67 : vector<32x256xf32> to vector<1x32x256xf32>
    tpu.vector_store %arg6[%c0_22, %c0_23, %c0_24], %70 {strides = array<i32>} : memref<1x32x256xf32, #tpu.memory_space<vmem>>, vector<1x32x256xf32>,
    return
  }
  func.func @transform_0(%arg0: i32) -> (i32, i32, i32) {
    %c0_i32 = arith.constant 0 : i32
    %c0_i32_0 = arith.constant 0 : i32
    %c0_i32_1 = arith.constant 0 : i32
    return %arg0, %c0_i32, %c0_i32_0 : i32, i32, i32
  }
  func.func @transform_1(%arg0: i32) -> (i32, i32) {
    %c0_i32 = arith.constant 0 : i32
    %c0_i32_0 = arith.constant 0 : i32
    %c0_i32_1 = arith.constant 0 : i32
    return %c0_i32, %c0_i32_0 : i32, i32
  }
  func.func @transform_2(%arg0: i32) -> (i32, i32) {
    %c0_i32 = arith.constant 0 : i32
    %c0_i32_0 = arith.constant 0 : i32
    %c0_i32_1 = arith.constant 0 : i32
    return %c0_i32, %c0_i32_0 : i32, i32
  }
  func.func @transform_3(%arg0: i32) -> (i32, i32) {
    %c0_i32 = arith.constant 0 : i32
    %c0_i32_0 = arith.constant 0 : i32
    %c0_i32_1 = arith.constant 0 : i32
    return %c0_i32, %c0_i32_0 : i32, i32
  }
  func.func @transform_4(%arg0: i32) -> (i32, i32) {
    %c0_i32 = arith.constant 0 : i32
    %c0_i32_0 = arith.constant 0 : i32
    %c0_i32_1 = arith.constant 0 : i32
    return %c0_i32, %c0_i32_0 : i32, i32
  }
  func.func @transform_5(%arg0: i32) -> (i32, i32, i32) {
    %c0_i32 = arith.constant 0 : i32
    %c0_i32_0 = arith.constant 0 : i32
    %c0_i32_1 = arith.constant 0 : i32
    return %arg0, %c0_i32, %c0_i32_0 : i32, i32, i32
  }
}

</mosaic_0001>

<bundles_post_ra>
// kernel: tpu_custom_call.1
= control target key start
LH: loop header
LB: loop body
LE: loop exit
PB: predicated region body
PF: predicated region fallthrough
CT: control target
= control target key end

     0   :  { %10 = vsyncpa [#allocation3], 0  ;;  %s1647_s0 = inlined_call_operand.hbm [shape: f32[2,32,256], index: 0, kind: input, shape index: {}]   ;;  %s1648_s1 = inlined_call_operand.vmem [shape: bf16[96,32], index: 1, kind: input, shape index: {}]   ;;  %s1649_s2 = inlined_call_operand.vmem [shape: bf16[32,32], index: 2, kind: input, shape index: {}]   ;;  %s1650_s3 = inlined_call_operand.vmem [shape: f32[32,32], index: 3, kind: input, shape index: {}]   ;;  %s1651_s4 = inlined_call_operand.vmem [shape: f32[32,2], index: 4, kind: input, shape index: {}]   ;;  %s1652_s5 = inlined_call_operand.hbm [shape: f32[2,32,256], index: 5, kind: output, shape index: {}]  }
   0x1   :  { %12 = vsyncpa [#allocation3 + $0x1], 0 }
   0x2   :  { %13 = vsyncpa [#allocation4], 0 }
   0x3   :  { %15 = vsyncpa [#allocation4 + $0x1], 0  ;;  %s1329_s18 = smov 0   ;;  %s1331_s19 = smov 0  }
   0x4   :  { %s1333_s20 = smov 0   ;;  %s1335_s21 = smov 0  }
   0x5 LB: > { %s1350_s22 = sadd.s32 4294967295, %s1289_s21   ;;  %s1025_s23 = sadd.s32 4294967294, %s1289_s21   ;;  %s1289_s21 = sphi %s1335_s21, %s1667_s21   ;;  %s1285_s20 = sphi %s1333_s20, %s1666_s20   ;;  %s1281_s19 = sphi %s1331_s19, %s1665_s19   ;;  %s1277_s18 = sphi %s1329_s18, %s1664_s18  }
   0x6   : > { %s1354_s24 = sadd.s32 1, %s1289_s21   ;;  %s28_s25 = sadd.s32 1, %s1285_s20 }
   0x7   : > { %s25_s26 = ssub.s32 %s1289_s21, %s1354_s24  ;;  %p35_p0 = scmp.ne.s32.totalorder %s1285_s20, %s1281_s19 }
   0x8   : > { %p26_p1 = scmp.eq.s32.totalorder %s25_s26, 0  ;;  %p36_p2 = scmp.eq.s32.totalorder %s1289_s21, 0 }
   0x9   : > { %p41_p3 = scmp.ne.s32.totalorder %s1281_s19, %s1277_s18  ;;  %p42_p4 = scmp.eq.s32.totalorder %s1350_s22, 0 }
   0xa   : > { %s1366_s27 = scalar_select %p26_p1, %s1285_s20, %s28_s25  }
   0xb   : > { %p1368_p5 = por %p36_p2, %p35_p0  ;;  %p1372_p6 = por %p42_p4, %p41_p3 }
   0xc   : > { %p149_p7 = scmp.eq.s32.totalorder %s1350_s22, 1  ;;  %p155_p8 = scmp.eq.s32.totalorder %s1025_s23, 1 }
   0xd   : > { %s1656_s29 = scalar_select %p1372_p6, 1, 0 }
   0xe   : > { %p1085_p10 = scmp.lt.s32.totalorder %s1289_s21, 2  ;;  %p1379_p11 = por %p149_p7, %p35_p0 }
   0xf   : > { %p1383_p12 = por %p155_p8, %p41_p3  ;;  %s187_s7 = sand.u32 1, %s1285_s20  }
  0x10   : > { %s1657_s30 = scalar_select %p1379_p11, 1, 0 }
  0x11   : > { %s1658_s6 = scalar_select %p1383_p12, 1, 0 }
  0x12   : > { %s1057_s8 = sshll.u32 %s1289_s21, 10  ;;  %s1028_s9 = sshll.u32 %s187_s7, 6 }
  0x13   : > { %s1392_s12 = scalar_lea.hbm %s1647_s0, %s1057_s8  ;;  %s191_s13 = scalar_lea.vmem [#allocation2], %s1028_s9 }
  0x14   : > { %s198_s14 = sshll.u32 %s191_s13, 4  ;;  %p1396_p13 = pnand %p1085_p10, %p1368_p5  ;;  %s1400_s14 = int_to_ptr.vmem [resolvable:$true] %s198_s14 }
  0x15   : > { %s1402_s16 = scalar_lea.sflag [#allocation3], %s187_s7  ;;  %s1197_s17 = scalar_lea.hbm %s1392_s12, 1024 }
  0x16   : > { %p1198_p0 = scmp.ne.s32.totalorder %s1392_s12, %s1197_s17  ;;  %p1199_p1 = pneg %p1396_p13 }
  0x17   : > { %s1202_s26 = scalar_lea.hbm %s1647_s0, 2048  ;;  %p1203_p4 = scmp.lt.s32.totalorder %s1392_s12, %s1647_s0 }
  0x18   : > { %p1200_p2 = pnand %p1199_p1, %p1198_p0  ;;  %p1204_p5 = scmp.lt.s32.totalorder %s1202_s26, %s1197_s17 }
  0x1a   : > { %p1201_p3 = pneg %p1200_p2  ;;  %p1205_p7 = por %p1204_p5, %p1203_p4 }
  0x1c   : > { %p1206_p8 = pnand %p1205_p7, %p1201_p3 }
  0x1e   : > { %1209 = shalt.err (!%p1206_p8)
}
  0x1f   : > { %s1210_s7 = scalar_lea.vmem %s1400_s14, 1024  ;;  %s1291_s9 = smov [#allocation2]  }
  0x20   : > { %p1211_p10 = scmp.ne.s32.totalorder %s1400_s14, %s1210_s7  ;;  %s1215_s10 = sshll.u32 %s1291_s9, 4  ;;  %s1216_s10 = int_to_ptr.vmem [resolvable:$false] %s1215_s10 }
  0x21   : > { %s1217_s11 = scalar_lea.vmem %s1216_s10, 2048  ;;  %p1218_p2 = scmp.lt.s32.totalorder %s1400_s14, %s1216_s10 }
  0x22   : > { %p1213_p9 = pnand %p1211_p10, %p1199_p1  ;;  %p1219_p12 = scmp.lt.s32.totalorder %s1217_s11, %s1210_s7 }
  0x24   : > { %p1214_p0 = pneg %p1213_p9  ;;  %p1220_p11 = por %p1219_p12, %p1218_p2 }
  0x26   : > { %p1221_p6 = pnand %p1220_p11, %p1214_p0 }
  0x28   : > { %1224 = shalt.err (!%p1221_p6)
}
  0x29   : > { %s1292_s13 = smov 256   ;;  %s1293_s17 = smov 16  }
  0x2a   : > { %1080 = dma.hbm_to_vmem [thread:$0]  (!%p1396_p13), %s1392_s12, 1024, %s1400_s14, %s1402_s16, %s1292_s13, %s1292_s13, %s1293_s17  }
  0x2b   : > { %p1031_p9 = scmp.ge.s32.totalorder %s1289_s21, 1  ;;  %p206_p1 = scmp.lt.s32.totalorder %s1289_s21, 3 }
  0x2d   : > { %p207_p3 = pnand %p1031_p9, %p206_p1 }
  0x2e   : > { %s1426_s23 = sand.u32 (!%p207_p3), 1, %s1281_s19   ;;  %p1660_p6 = scmp.ne.s32.totalorder (!%p207_p3), %s1656_s29, 0 }
  0x2f   : > { %210 = sbr.rel (%p207_p3) target bundleno = 1308 (0x51c), region = 40  ;;  %s1032_s25 = sshll.u32 (!%p207_p3), %s1426_s23, 6 }
  0x30   : > { %s213_s26 = scalar_lea.sflag (!%p207_p3), [#allocation3], %s1426_s23  ;;  %s216_s28 = scalar_lea.vmem (!%p207_p3), [#allocation2], %s1032_s25 }
  0x34   : > { %1268 = dma.done.wait (%p1660_p6), %s213_s26, 1024  }
  0x35   : > { %1270 = vsyncadd (%p1660_p6), %s213_s26, 4294966272  ;;  %v1294_v0 = vmov 0   ;;  %v249_v1 = vld [vmem:[%s216_s28 + $0x28] sm:$0xff]  ;;  %v251_v2 = vld [vmem:[%s216_s28 + $0x38] sm:$0xff]  ;;  %vm298_vm0 = vcmask 261120   ;;  %s242_s16 = scalar_lea.vmem [#allocation5], %s1032_s25 }
  0x36   : > { %349 = vmatprep.mubr.bf16.mxu0 %v1294_v0  ;;  %1126 = vset.pattern.permute.xlu1 %v1294_v0  ;;  %v248_v3 = vld [vmem:[%s216_s28 + $0x20] sm:$0xff]  ;;  %v267_v4 = vpack.c.bf16 %v251_v2, %v249_v1  ;;  %v250_v5 = vld [vmem:[%s216_s28 + $0x30] sm:$0xff]  ;;  %v245_v6 = vld [vmem:[%s216_s28 + $0x8] sm:$0xff]  ;;  %s952_s8 = sshll.u32 %s242_s16, 4  ;;  %s1058_s7 = sshll.u32 %s1350_s22, 10  ;;  %s1599_s8 = int_to_ptr.vmem [resolvable:$true] %s952_s8 }
  0x37   : > { %1125 = vset.pattern.permute.xlu0 %v1294_v0  ;;  %v247_v7 = vld [vmem:[%s216_s28 + $0x18] sm:$0xff]  ;;  %v266_v8 = vpack.c.bf16 %v250_v5, %v248_v3  ;;  %v244_v10 = vld [vmem:[%s216_s28] sm:$0xff]  ;;  %v246_v11 = vld [vmem:[%s216_s28 + $0x10] sm:$0xff]  ;;  %s1604_s9 = scalar_lea.hbm %s1652_s5, %s1058_s7  ;;  %s939_s10 = scalar_lea.sflag [#allocation4], %s1426_s23 }
  0x38   : > { %v265_v9 = vpack.c.bf16 %v247_v7, %v245_v6  ;;  %329 = vmatprep.subr.bf16.mxu0 %v267_v4  ;;  %v264_v12 = vpack.c.bf16 %v246_v11, %v244_v10  ;;  %v1129_v13 = vld [vmem:[%s1648_s1] sm:$0xff]   ;;  %v1130_v14 = vld [vmem:[%s1648_s1 + $0x8] sm:$0xff]   ;;  %v1131_v15 = vld [vmem:[%s1648_s1 + $0x10] sm:$0xff]   ;;  %s1225_s11 = scalar_lea.vmem %s1599_s8, 1024  ;;  %p1661_p12 = scmp.ne.s32.totalorder %s1657_s30, 0 }
  0x39   : > { %330 = vmatpush1.bf16.msra.mxu0 %v266_v8  ;;  %v1132_v16 = vld [vmem:[%s1648_s1 + $0x18] sm:$0xff]   ;;  %v1133_v17 = vld [vmem:[%s1648_s1 + $0x20] sm:$0xff]   ;;  %v1134_v18 = vld [vmem:[%s1648_s1 + $0x28] sm:$0xff]   ;;  %p1226_p11 = scmp.ne.s32.totalorder %s1599_s8, %s1225_s11  ;;  %s1296_s13 = smov [#allocation5]  }
  0x3a   : > { %331 = vmatprep.subr.bf16.mxu0 %v265_v9  ;;  %s1229_s17 = sshll.u32 %s1296_s13, 4  ;;  %s1230_s17 = int_to_ptr.vmem [resolvable:$false] %s1229_s17 }
  0x3b   : > { %p1227_p13 = pnand %p1226_p11, %p1661_p12  ;;  %s1231_s26 = scalar_lea.vmem %s1230_s17, 2048 }
  0x3c   : > { %p1232_p5 = scmp.lt.s32.totalorder %s1599_s8, %s1230_s17  ;;  %p1233_p7 = scmp.lt.s32.totalorder %s1231_s26, %s1225_s11 }
  0x3d   : > { %332 = vmatpush1.bf16.msra.mxu0 %v264_v12  ;;  %p1228_p4 = pneg %p1227_p13 }
  0x3e   : > { %p1234_p8 = por %p1233_p7, %p1232_p5 }
  0x40   : > { %1040 = vmatmul.mubr.msk.bf16.vlgmr.msra.gmra.mxu0 %vm298_vm0, %v1129_v13  ;;  %p1235_p10 = pnand %p1234_p8, %p1228_p4 }
  0x41   : > { %359 = vmatprep.mubr.bf16.mxu0 %v1294_v0 }
  0x48   : > { %1041 = vmatmul.mubr.msk.bf16.gmra.mxu0 %vm298_vm0, %v1130_v14 }
  0x49   : > { %369 = vmatprep.mubr.bf16.mxu0 %v1294_v0 }
  0x50   : > { %1042 = vmatmul.mubr.msk.bf16.gmra.mxu0 %vm298_vm0, %v1131_v15 }
  0x51   : > { %379 = vmatprep.mubr.bf16.mxu0 %v1294_v0 }
  0x58   : > { %1043 = vmatmul.mubr.msk.bf16.gmra.mxu0 %vm298_vm0, %v1132_v16 }
  0x59   : > { %389 = vmatprep.mubr.bf16.mxu0 %v1294_v0 }
  0x60   : > { %1044 = vmatmul.mubr.msk.bf16.gmra.mxu0 %vm298_vm0, %v1133_v17 }
  0x61   : > { %399 = vmatprep.mubr.bf16.mxu0 %v1294_v0 }
  0x68   : > { %1045 = vmatmul.mubr.msk.bf16.gmra.mxu0 %vm298_vm0, %v1134_v18 }
 0x100   : > { %v351_v19 = vpop.f32.mrf.mxu0 }
 0x101   : > { %v470_v20 = vrot.slane %v351_v19, 4 }
 0x102   : > { %v353_v21 = vpop.f32.mrf.mxu0 }
 0x103   : > { %v471_v22 = vmax.f32 %v351_v19, %v470_v20  ;;  %v476_v23 = vrot.slane %v353_v21, 4 }
 0x104   : > { %v355_v24 = vpop.f32.mrf.mxu0 }
 0x105   : > { %v472_v25 = vrot.slane %v471_v22, 2  ;;  %v477_v26 = vmax.f32 %v353_v21, %v476_v23  ;;  %v482_v27 = vrot.slane %v355_v24, 4 }
 0x106   : > { %v357_v28 = vpop.f32.mrf.mxu0 }
 0x107   : > { %v473_v29 = vmax.f32 %v471_v22, %v472_v25  ;;  %v478_v30 = vrot.slane %v477_v26, 2  ;;  %v483_v31 = vmax.f32 %v355_v24, %v482_v27  ;;  %v488_v32 = vrot.slane %v357_v28, 4 }
 0x108   : > { %v361_v33 = vpop.f32.mrf.mxu0 }
 0x109   : > { %v474_v34 = vrot.slane %v473_v29, 1  ;;  %v479_v35 = vmax.f32 %v477_v26, %v478_v30  ;;  %v484_v36 = vrot.slane %v483_v31, 2  ;;  %v489_v37 = vmax.f32 %v357_v28, %v488_v32 }
 0x10a   : > { %v494_v38 = vrot.slane %v361_v33, 4  ;;  %v363_v39 = vpop.f32.mrf.mxu0 }
 0x10b   : > { %v475_v40 = vmax.f32 %v473_v29, %v474_v34  ;;  %v480_v41 = vrot.slane %v479_v35, 1  ;;  %v485_v42 = vmax.f32 %v483_v31, %v484_v36  ;;  %v490_v43 = vrot.slane %v489_v37, 2 }
 0x10c   : > { %v495_v44 = vmax.f32 %v361_v33, %v494_v38  ;;  %v500_v45 = vrot.slane %v363_v39, 4  ;;  %v365_v46 = vpop.f32.mrf.mxu0 }
 0x10d   : > { %v518_v47 = vsub.f32 %v351_v19, %v475_v40  ;;  %v481_v48 = vmax.f32 %v479_v35, %v480_v41  ;;  %v486_v49 = vrot.slane %v485_v42, 1  ;;  %v491_v50 = vmax.f32 %v489_v37, %v490_v43 }
 0x10e   : > { %v496_v51 = vrot.slane %v495_v44, 2  ;;  %v501_v52 = vmax.f32 %v363_v39, %v500_v45  ;;  %v506_v53 = vrot.slane %v365_v46, 4  ;;  %v367_v54 = vpop.f32.mrf.mxu0 }
 0x10f   : > { %v526_v55 = vmul.f32 1.442695, %v518_v47  ;;  %v519_v56 = vsub.f32 %v353_v21, %v481_v48  ;;  %v487_v57 = vmax.f32 %v485_v42, %v486_v49  ;;  %v492_v58 = vrot.slane %v491_v50, 1 }
 0x110   : > { %v497_v59 = vmax.f32 %v495_v44, %v496_v51  ;;  %v502_v60 = vrot.slane %v501_v52, 2  ;;  %v507_v61 = vmax.f32 %v365_v46, %v506_v53  ;;  %v512_v62 = vrot.slane %v367_v54, 4  ;;  %v1468_v63 = vpop.f32.mrf.mxu0 }
 0x111   : > { %1137 = vpow2.f32 %v526_v55  ;;  %v528_v1 = vmul.f32 1.442695, %v519_v56  ;;  %v520_v2 = vsub.f32 %v355_v24, %v487_v57  ;;  %v493_v3 = vmax.f32 %v491_v50, %v492_v58 }
 0x112   : > { %v498_v4 = vrot.slane %v497_v59, 1  ;;  %v503_v5 = vmax.f32 %v501_v52, %v502_v60  ;;  %v508_v6 = vrot.slane %v507_v61, 2  ;;  %v513_v7 = vmax.f32 %v367_v54, %v512_v62  ;;  %v1470_v8 = vpop.f32.mrf.mxu0 }
 0x113   : > { %1139 = vpow2.f32 %v528_v1  ;;  %v530_v9 = vmul.f32 1.442695, %v520_v2  ;;  %v521_v10 = vsub.f32 %v357_v28, %v493_v3  ;;  %v410_v11 = vmax.f32 %v1468_v63, %v1470_v8 }
 0x114   : > { %v499_v12 = vmax.f32 %v497_v59, %v498_v4  ;;  %v504_v13 = vrot.slane %v503_v5, 1  ;;  %v509_v14 = vmax.f32 %v507_v61, %v508_v6  ;;  %v514_v15 = vrot.slane %v513_v7, 2  ;;  %v1474_v16 = vpop.f32.mrf.mxu0 }
 0x115   : > { %1141 = vpow2.f32 %v530_v9  ;;  %v532_v17 = vmul.f32 1.442695, %v521_v10  ;;  %411 = vmax.xlane.f32.xlu0 %v410_v11 }
 0x116   : > { %v522_v18 = vsub.f32 %v361_v33, %v499_v12  ;;  %v505_v19 = vmax.f32 %v503_v5, %v504_v13  ;;  %v510_v20 = vrot.slane %v509_v14, 1  ;;  %v515_v21 = vmax.f32 %v513_v7, %v514_v15  ;;  %v1476_v22 = vpop.f32.mrf.mxu0 }
 0x117   : > { %1143 = vpow2.f32 %v532_v17  ;;  %v413_v23 = vmax.f32 %v1474_v16, %v1476_v22 }
 0x118   : > { %v534_v24 = vmul.f32 1.442695, %v522_v18  ;;  %v523_v25 = vsub.f32 %v363_v39, %v505_v19  ;;  %v511_v26 = vmax.f32 %v509_v14, %v510_v20  ;;  %v516_v27 = vrot.slane %v515_v21, 1  ;;  %v1480_v28 = vpop.f32.mrf.mxu0 }
 0x119   : > { %414 = vmax.xlane.f32.xlu0 %v413_v23 }
 0x11a   : > { %1145 = vpow2.f32 %v534_v24  ;;  %v536_v29 = vmul.f32 1.442695, %v523_v25  ;;  %v524_v30 = vsub.f32 %v365_v46, %v511_v26  ;;  %v517_v31 = vmax.f32 %v515_v21, %v516_v27  ;;  %v1482_v32 = vpop.f32.mrf.mxu0 }
 0x11b   : > { %v416_v33 = vmax.f32 %v1480_v28, %v1482_v32 }
 0x11c   : > { %1147 = vpow2.f32 %v536_v29  ;;  %v538_v34 = vmul.f32 1.442695, %v524_v30  ;;  %v525_v35 = vsub.f32 %v367_v54, %v517_v31  ;;  %v1486_v36 = vpop.f32.mrf.mxu0 }
 0x11d   : > { %417 = vmax.xlane.f32.xlu1 %v416_v33 }
 0x11e   : > { %v1488_v37 = vpop.eup %1137  ;;  %1149 = vpow2.f32 %v538_v34  ;;  %v540_v38 = vmul.f32 1.442695, %v525_v35  ;;  %v1490_v39 = vpop.f32.mrf.mxu0 }
 0x11f   : > { %v419_v40 = vmax.f32 %v1486_v36, %v1490_v39  ;;  %v542_v41 = vrot.slane %v1488_v37, 4 }
 0x120   : > { %v1495_v42 = vpop.eup %1139  ;;  %1151 = vpow2.f32 %v540_v38 }
 0x121   : > { %420 = vmax.xlane.f32.xlu1 %v419_v40  ;;  %v548_v43 = vrot.slane %v1495_v42, 4  ;;  %v543_v44 = vadd.f32 %v1488_v37, %v542_v41 }
 0x122   : > { %v1499_v45 = vpop.eup %1141 }
 0x123   : > { %v549_v46 = vadd.f32 %v1495_v42, %v548_v43  ;;  %v544_v47 = vrot.slane %v543_v44, 2  ;;  %v554_v48 = vrot.slane %v1499_v45, 4 }
 0x124   : > { %v1144_v49 = vpop.eup %1143 }
 0x125   : > { %v550_v50 = vrot.slane %v549_v46, 2  ;;  %v560_v51 = vrot.slane %v1144_v49, 4  ;;  %v545_v52 = vadd.f32 %v544_v47, %v543_v44  ;;  %v555_v53 = vadd.f32 %v1499_v45, %v554_v48 }
 0x127   : > { %v1504_v54 = vpop.eup %1145  ;;  %v551_v55 = vadd.f32 %v550_v50, %v549_v46  ;;  %v561_v56 = vadd.f32 %v1144_v49, %v560_v51  ;;  %v546_v57 = vrot.slane %v545_v52, 1  ;;  %v556_v58 = vrot.slane %v555_v53, 2 }
 0x128   : > { %v566_v59 = vrot.slane %v1504_v54, 4 }
 0x129   : > { %v1148_v60 = vpop.eup %1147  ;;  %v552_v61 = vrot.slane %v551_v55, 1  ;;  %v562_v62 = vrot.slane %v561_v56, 2  ;;  %v547_v1 = vadd.f32 %v546_v57, %v545_v52  ;;  %v557_v2 = vadd.f32 %v556_v58, %v555_v53 }
 0x12a   : > { %v572_v3 = vrot.slane %v1148_v60, 4  ;;  %v567_v4 = vadd.f32 %v1504_v54, %v566_v59 }
 0x12b   : > { %v1150_v5 = vpop.eup %1149  ;;  %v553_v6 = vadd.f32 %v552_v61, %v551_v55  ;;  %v563_v7 = vadd.f32 %v562_v62, %v561_v56  ;;  %v558_v9 = vrot.slane %v557_v2, 1  ;;  %1153 = vrcp.f32 %v547_v1  ;;  %v391_v1 = vpop.f32.mrf.mxu0 }
 0x12c   : > { %v573_v10 = vadd.f32 %v1148_v60, %v572_v3  ;;  %v568_v11 = vrot.slane %v567_v4, 2  ;;  %v578_v12 = vrot.slane %v1150_v5, 4 }
 0x12d   : > { %v1152_v13 = vpop.eup %1151  ;;  %v564_v14 = vrot.slane %v563_v7, 1  ;;  %1155 = vrcp.f32 %v553_v6  ;;  %v559_v15 = vadd.f32 %v558_v9, %v557_v2  ;;  %v393_v2 = vpop.f32.mrf.mxu0 }
 0x12e   : > { %v574_v17 = vrot.slane %v573_v10, 2  ;;  %v584_v18 = vrot.slane %v1152_v13, 4  ;;  %v569_v19 = vadd.f32 %v568_v11, %v567_v4  ;;  %v579_v20 = vadd.f32 %v1150_v5, %v578_v12 }
 0x12f   : > { %v565_v21 = vadd.f32 %v564_v14, %v563_v7  ;;  %1157 = vrcp.f32 %v559_v15  ;;  %v395_v3 = vpop.f32.mrf.mxu0 }
 0x130   : > { %v575_v23 = vadd.f32 %v574_v17, %v573_v10  ;;  %v585_v24 = vadd.f32 %v1152_v13, %v584_v18  ;;  %v570_v25 = vrot.slane %v569_v19, 1  ;;  %v580_v26 = vrot.slane %v579_v20, 2 }
 0x131   : > { %1159 = vrcp.f32 %v565_v21  ;;  %v397_v4 = vpop.f32.mrf.mxu0  ;;  %v610_v11 = vpack.c.bf16 %v395_v3, %v391_v1 }
 0x132   : > { %v576_v27 = vrot.slane %v575_v23, 1  ;;  %v586_v29 = vrot.slane %v585_v24, 2  ;;  %v571_v30 = vadd.f32 %v570_v25, %v569_v19  ;;  %v581_v31 = vadd.f32 %v580_v26, %v579_v20 }
 0x133   : > { %v401_v6 = vpop.f32.mrf.mxu0  ;;  %v611_v10 = vpack.c.bf16 %v397_v4, %v393_v2 }
 0x134   : > { %v577_v33 = vadd.f32 %v576_v27, %v575_v23  ;;  %v587_v34 = vadd.f32 %v586_v29, %v585_v24  ;;  %v582_v35 = vrot.slane %v581_v31, 1  ;;  %1161 = vrcp.f32 %v571_v30 }
 0x136   : > { %v588_v38 = vrot.slane %v587_v34, 1  ;;  %v583_v40 = vadd.f32 %v582_v35, %v581_v31  ;;  %1163 = vrcp.f32 %v577_v33 }
 0x138   : > { %v589_v41 = vadd.f32 %v588_v38, %v587_v34  ;;  %1165 = vrcp.f32 %v583_v40  ;;  %v1154_v43 = vpop.eup %1153 }
 0x139   : > { %v1509_v47 = vmul.f32 %v1154_v43, %v1488_v37 }
 0x13a   : > { %v1156_v44 = vpop.eup %1155  ;;  %1167 = vrcp.f32 %v589_v41 }
 0x13b   : > { %v1515_v51 = vmul.f32 %v1156_v44, %v1495_v42 }
 0x13c   : > { %v1158_v46 = vpop.eup %1157 }
 0x13d   : > { %v1512_v48 = vmul.f32 %v1158_v46, %v1499_v45 }
 0x13e   : > { %v1160_v50 = vpop.eup %1159 }
 0x13f   : > { %v1517_v52 = vmul.f32 %v1160_v50, %v1144_v49  ;;  %v754_v53 = vpack.c.bf16 %v1512_v48, %v1509_v47  ;;  %v751_v47 = vld [vmem:[%s1651_s4 + $0x18] sm:$0xff] }
 0x141   : > { %v755_v55 = vpack.c.bf16 %v1517_v52, %v1515_v51  ;;  %v1162_v56 = vpop.eup %1161  ;;  %v1295_v51 = vmov 1  }
 0x142   : > { %v1524_v37 = vmul.f32 %v1162_v56, %v1504_v54  ;;  %v403_v54 = vpop.f32.mrf.mxu0 }
 0x143   : > { %v1164_v57 = vpop.eup %1163 }
 0x144   : > { %v1528_v61 = vmul.f32 %v1164_v57, %v1148_v60  ;;  %v405_v7 = vpop.f32.mrf.mxu0 }
 0x145   : > { %v1166_v58 = vpop.eup %1165 }
 0x146   : > { %v1526_v45 = vmul.f32 %v1166_v58, %v1150_v5  ;;  %v612_v5 = vpack.c.bf16 %v405_v7, %v401_v6  ;;  %v407_v9 = vpop.f32.mrf.mxu0 }
 0x147   : > { %v1168_v59 = vpop.eup %1167  ;;  %v613_v60 = vpack.c.bf16 %v407_v9, %v403_v54 }
 0x148   : > { %v1530_v42 = vmul.f32 %v1168_v59, %v1152_v13  ;;  %v756_v49 = vpack.c.bf16 %v1526_v45, %v1524_v37  ;;  %v750_v37 = vld [vmem:[%s1651_s4 + $0x10] sm:$0xff] }
 0x149   : > { %626 = vmatprep.subr.bf16.mxu1 %v613_v60 }
 0x14a   : > { %v757_v62 = vpack.c.bf16 %v1530_v42, %v1528_v61  ;;  %627 = vmatpush1.bf16.xpose.msra.mxu1 %v612_v5  ;;  %v749_v61 = vld [vmem:[%s1651_s4 + $0x8] sm:$0xff]  ;;  %v748_v42 = vld [vmem:[%s1651_s4] sm:$0xff] }
 0x14b   : > { %628 = vmatprep.subr.bf16.mxu1 %v611_v10 }
 0x152   : > { %629 = vmatpush1.bf16.xpose.msra.mxu1 %v610_v11 }
 0x19e   : > { %v412_v12 = vpop.xlane.xlu0 %411 }
 0x19f   : > { %v422_v13 = vsub.f32 %v1468_v63, %v412_v12  ;;  %v423_v14 = vsub.f32 %v1470_v8, %v412_v12 }
 0x1a1   : > { %v430_v15 = vmul.f32 1.442695, %v422_v13  ;;  %v432_v17 = vmul.f32 1.442695, %v423_v14  ;;  %v1135_v13 = vld [vmem:[%s1649_s2] sm:$0xff]  }
 0x1a2   : > { %v415_v18 = vpop.xlane.xlu0 %414 }
 0x1a3   : > { %1169 = vpow2.f32 %v430_v15  ;;  %v424_v19 = vsub.f32 %v1474_v16, %v415_v18  ;;  %v425_v20 = vsub.f32 %v1476_v22, %v415_v18 }
 0x1a4   : > { %1171 = vpow2.f32 %v432_v17 }
 0x1a5   : > { %v434_v21 = vmul.f32 1.442695, %v424_v19  ;;  %v436_v23 = vmul.f32 1.442695, %v425_v20  ;;  %v664_v20 = vld [vmem:[%s1650_s3 + $0x8] sm:$0xff] }
 0x1a6   : > { %v418_v24 = vpop.xlane.xlu1 %417 }
 0x1a7   : > { %1173 = vpow2.f32 %v434_v21  ;;  %v426_v25 = vsub.f32 %v1480_v28, %v418_v24  ;;  %v427_v26 = vsub.f32 %v1482_v32, %v418_v24  ;;  %v665_v21 = vld [vmem:[%s1650_s3 + $0x10] sm:$0xff]  ;;  %v666_v24 = vld [vmem:[%s1650_s3 + $0x18] sm:$0xff] }
 0x1a8   : > { %1175 = vpow2.f32 %v436_v23 }
 0x1a9   : > { %v438_v63 = vmul.f32 1.442695, %v426_v25  ;;  %v440_v8 = vmul.f32 1.442695, %v427_v26  ;;  %v663_v25 = vld [vmem:[%s1650_s3] sm:$0xff] }
 0x1aa   : > { %v421_v27 = vpop.xlane.xlu1 %420 }
 0x1ab   : > { %1177 = vpow2.f32 %v438_v63  ;;  %v428_v29 = vsub.f32 %v1486_v36, %v421_v27  ;;  %v429_v16 = vsub.f32 %v1490_v39, %v421_v27 }
 0x1ac   : > { %1179 = vpow2.f32 %v440_v8 }
 0x1ad   : > { %v442_v22 = vmul.f32 1.442695, %v428_v29  ;;  %v444_v30 = vmul.f32 1.442695, %v429_v16 }
 0x1af   : > { %1181 = vpow2.f32 %v442_v22 }
 0x1b0   : > { %v1170_v31 = vpop.eup %1169  ;;  %1183 = vpow2.f32 %v444_v30 }
 0x1b1   : > { %v1172_v33 = vpop.eup %1171 }
 0x1b2   : > { %v446_v34 = vadd.f32 %v1172_v33, %v1170_v31 }
 0x1b4   : > { %v1174_v28 = vpop.eup %1173  ;;  %447 = vadd.xlane.f32.xlu0 %v446_v34  ;;  %v1136_v34 = vld [vmem:[%s1649_s2 + $0x8] sm:$0xff]  }
 0x1b5   : > { %v1176_v32 = vpop.eup %1175 }
 0x1b6   : > { %v449_v35 = vadd.f32 %v1176_v32, %v1174_v28 }
 0x1b8   : > { %v1178_v38 = vpop.eup %1177  ;;  %450 = vadd.xlane.f32.xlu1 %v449_v35 }
 0x1b9   : > { %v1180_v40 = vpop.eup %1179 }
 0x1ba   : > { %v452_v41 = vadd.f32 %v1180_v40, %v1178_v38 }
 0x1bc   : > { %v1182_v43 = vpop.eup %1181  ;;  %453 = vadd.xlane.f32.xlu0 %v452_v41 }
 0x1bd   : > { %v1184_v36 = vpop.eup %1183 }
 0x1be   : > { %v455_v39 = vadd.f32 %v1184_v36, %v1182_v43 }
 0x1c0   : > { %456 = vadd.xlane.f32.xlu1 %v455_v39 }
 0x1d1   : > { %765 = vperm.xlu1 %1126, %v749_v61  }
 0x1d2   : > { %760 = vperm.xlu0 %1125, %v748_v42  }
 0x1d5   : > { %770 = vperm.xlu1 %1126, %v750_v37  }
 0x1d6   : > { %1128 = vset.pattern.permute.xlu0 %v1295_v51 }
 0x1d9   : > { %775 = vperm.xlu1 %1126, %v751_v47  }
 0x1dd   : > { %1127 = vset.pattern.permute.xlu1 %v1295_v51 }
 0x1de   : > { %907 = vperm.xlu1 %1127, %v748_v42  }
 0x1e2   : > { %911 = vperm.xlu1 %1127, %v749_v61  }
 0x1e6   : > { %915 = vperm.xlu1 %1127, %v750_v37  }
 0x1ea   : > { %919 = vperm.xlu1 %1127, %v751_v47  }
 0x23d   : > { %v448_v44 = vpop.xlane.xlu0 %447 }
 0x23e   : > { %1185 = vrcp.f32 %v448_v44 }
 0x241   : > { %v451_v46 = vpop.xlane.xlu1 %450 }
 0x242   : > { %1187 = vrcp.f32 %v451_v46 }
 0x245   : > { %v454_v50 = vpop.xlane.xlu0 %453 }
 0x246   : > { %1189 = vrcp.f32 %v454_v50 }
 0x249   : > { %v457_v56 = vpop.xlane.xlu1 %456 }
 0x24a   : > { %1191 = vrcp.f32 %v457_v56 }
 0x24b   : > { %v1186_v57 = vpop.eup %1185 }
 0x24c   : > { %v463_v59 = vmul.f32 %v1186_v57, %v1172_v33  ;;  %v462_v2 = vmul.f32 %v1186_v57, %v1170_v31 }
 0x24f   : > { %v1188_v58 = vpop.eup %1187 }
 0x250   : > { %v465_v1 = vmul.f32 %v1188_v58, %v1176_v32  ;;  %v464_v3 = vmul.f32 %v1188_v58, %v1174_v28 }
 0x252   : > { %v607_v4 = vpack.c.bf16 %v465_v1, %v463_v59  ;;  %v606_v6 = vpack.c.bf16 %v464_v3, %v462_v2 }
 0x253   : > { %v1190_v54 = vpop.eup %1189 }
 0x254   : > { %646 = vmatprep.mubr.bf16.mxu1 %v607_v4  ;;  %v467_v5 = vmul.f32 %v1190_v54, %v1180_v40  ;;  %v466_v10 = vmul.f32 %v1190_v54, %v1178_v38  ;;  %v761_v38 = vpop.permute.xlu0 %760 }
 0x255   : > { %647 = vmatmul.mubr.bf16.vlgmr.msra.gmra.mxu1 %v606_v6 }
 0x257   : > { %v1192_v7 = vpop.eup %1191 }
 0x258   : > { %v469_v9 = vmul.f32 %v1192_v7, %v1184_v36  ;;  %v468_v60 = vmul.f32 %v1192_v7, %v1182_v43 }
 0x25a   : > { %v609_v11 = vpack.c.bf16 %v469_v9, %v467_v5  ;;  %v608_v12 = vpack.c.bf16 %v468_v60, %v466_v10 }
 0x25c   : > { %654 = vmatprep.mubr.bf16.mxu1 %v609_v11 }
 0x25d   : > { %655 = vmatmul.mubr.bf16.gmra.mxu1 %v608_v12 }
 0x25e   : > { %1067 = vmatprep.mubr.msk.bf16.mxu1 %vm298_vm0, %v1135_v13 }
 0x315   : > { %v648_v14 = vpop.f32.mrf.mxu1 }
 0x316   : > { %v667_v16 = vmul.f32 %v663_v25, %v648_v14 }
 0x317   : > { %v650_v15 = vpop.f32.mrf.mxu1 }
 0x319   : > { %v651_v17 = vpop.f32.mrf.mxu1 }
 0x31a   : > { %v668_v63 = vmul.f32 %v664_v20, %v651_v17 }
 0x31b   : > { %v653_v18 = vpop.f32.mrf.mxu1 }
 0x31c   : > { %v675_v30 = vpack.c.bf16 %v668_v63, %v667_v16 }
 0x31d   : > { %v656_v19 = vpop.f32.mrf.mxu1 }
 0x31e   : > { %v669_v8 = vmul.f32 %v665_v21, %v656_v19  ;;  %v694_v33 = vsel %vm298_vm0, %v675_v30, 0 }
 0x31f   : > { %v658_v23 = vpop.f32.mrf.mxu1 }
 0x321   : > { %v659_v26 = vpop.f32.mrf.mxu1 }
 0x322   : > { %v670_v27 = vmul.f32 %v666_v24, %v659_v26 }
 0x323   : > { %v661_v29 = vpop.f32.mrf.mxu1 }
 0x324   : > { %v676_v22 = vpack.c.bf16 %v670_v27, %v669_v8 }
 0x326   : > { %1071 = vmatprep.subr.msk.bf16.mxu1 %vm298_vm0, %v676_v22  ;;  %v697_v31 = vsel %vm298_vm0, %v676_v22, 0 }
 0x327   : > { %1064 = vmatpush3.bf16.xpose.msra.mxu1 %v697_v31 }
 0x328   : > { %1072 = vmatprep.subr.msk.bf16.mxu1 %vm298_vm0, %v675_v30 }
 0x32f   : > { %1066 = vmatpush3.bf16.xpose.msra.mxu1 %v694_v33 }
 0x330   : > { %796 = vmatprep.subr.bf16.mxu1 %v757_v62  ;;  %v766_v62 = vpop.permute.xlu1 %765 }
 0x334   : > { %v771_v40 = vpop.permute.xlu1 %770 }
 0x336   : > { %1068 = vmatmul.mubr.msk.bf16.vlgmr.msra.gmra.mxu1 %vm298_vm0, %v1136_v34 }
 0x337   : > { %797 = vmatpush1.bf16.msra.mxu1 %v756_v49  ;;  %816 = vmatprep.mubr.bf16.mxu1 %v1294_v0 }
 0x338   : > { %798 = vmatprep.subr.bf16.mxu1 %v755_v55 }
 0x33b   : > { %799 = vmatpush1.bf16.msra.mxu1 %v754_v53 }
 0x3f6   : > { %v1069_v48 = vpop.f32.mrf.mxu1 }
 0x3f8   : > { %v733_v52 = vpop.f32.mrf.mxu1 }
 0x3fa   : > { %v1070_v53 = vpop.f32.mrf.mxu1 }
 0x3fb   : > { %v753_v49 = vpack.c.bf16 %v1070_v53, %v1069_v48 }
 0x3fc   : > { %v736_v55 = vpop.f32.mrf.mxu1 }
 0x3fd   : > { %v752_v45 = vpack.c.bf16 %v736_v55, %v733_v52 }
 0x3ff   : > { %1050 = vmatmul.mubr.msk.bf16.vlgmr.msra.gmra.mxu1 %vm298_vm0, %v752_v45 }
 0x400   : > { %826 = vmatprep.mubr.bf16.mxu1 %v1294_v0  ;;  %v776_v0 = vpop.permute.xlu1 %775 }
 0x407   : > { %1051 = vmatmul.mubr.msk.bf16.gmra.mxu1 %vm298_vm0, %v753_v49 }
 0x4bf   : > { %v818_v28 = vpop.f32.mrf.mxu1 }
 0x4c0   : > { %v819_v39 = vadd.f32 %v818_v28, %v761_v38 }
 0x4c1   : > { %v820_v32 = vpop.f32.mrf.mxu1 }
 0x4c2   : > { %v821_v56 = vadd.f32 %v820_v32, %v761_v38 }
 0x4c3   : > { %v822_v35 = vpop.f32.mrf.mxu1 }
 0x4c4   : > { %v823_v43 = vadd.f32 %v822_v35, %v766_v62 }
 0x4c5   : > { %v824_v41 = vpop.f32.mrf.mxu1 }
 0x4c6   : > { %v825_v44 = vadd.f32 %v824_v41, %v766_v62  ;;  %v837_v57 = vadd.f32 %v823_v43, %v819_v39 }
 0x4c7   : > { %v828_v36 = vpop.f32.mrf.mxu1 }
 0x4c8   : > { %v829_v46 = vadd.f32 %v828_v36, %v771_v40  ;;  %v846_v1 = vadd.f32 %v825_v44, %v821_v56 }
 0x4c9   : > { %v830_v50 = vpop.f32.mrf.mxu1 }
 0x4ca   : > { %v831_v58 = vadd.f32 %v830_v50, %v771_v40  ;;  %v838_v2 = vadd.f32 %v837_v57, %v829_v46 }
 0x4cb   : > { %v832_v59 = vpop.f32.mrf.mxu1 }
 0x4cc   : > { %v833_v3 = vadd.f32 %v832_v59, %v776_v0  ;;  %v847_v6 = vadd.f32 %v846_v1, %v831_v58 }
 0x4cd   : > { %v834_v4 = vpop.f32.mrf.mxu1 }
 0x4ce   : > { %v839_v54 = vadd.f32 %v838_v2, %v833_v3  ;;  %v835_v7 = vadd.f32 %v834_v4, %v776_v0 }
 0x4d0   : > { %v840_v5 = vrot.slane %v839_v54, 4  ;;  %v848_v9 = vadd.f32 %v847_v6, %v835_v7 }
 0x4d2   : > { %v841_v10 = vadd.f32 %v840_v5, %v839_v54  ;;  %v849_v60 = vrot.slane %v848_v9, 4 }
 0x4d4   : > { %v842_v11 = vrot.slane %v841_v10, 2  ;;  %v850_v12 = vadd.f32 %v849_v60, %v848_v9 }
 0x4d6   : > { %v843_v13 = vadd.f32 %v842_v11, %v841_v10  ;;  %v851_v14 = vrot.slane %v850_v12, 2 }
 0x4d8   : > { %v844_v15 = vrot.slane %v843_v13, 1  ;;  %v852_v17 = vadd.f32 %v851_v14, %v850_v12 }
 0x4da   : > { %v845_v18 = vadd.f32 %v844_v15, %v843_v13  ;;  %v853_v19 = vrot.slane %v852_v17, 1 }
 0x4dc   : > { %v856_v20 = vmul.f32 0.03125, %v845_v18  ;;  %v854_v21 = vadd.f32 %v853_v19, %v852_v17 }
 0x4de   : > { %v860_v23 = vsub.f32 %v823_v43, %v856_v20  ;;  %v857_v24 = vmul.f32 0.03125, %v854_v21  ;;  %v862_v25 = vsub.f32 %v829_v46, %v856_v20  ;;  %v858_v26 = vsub.f32 %v819_v39, %v856_v20  ;;  %v908_v46 = vpop.permute.xlu1 %907 }
 0x4df   : > { %v864_v63 = vsub.f32 %v833_v3, %v856_v20 }
 0x4e0   : > { %v861_v8 = vsub.f32 %v825_v44, %v857_v24  ;;  %v863_v27 = vsub.f32 %v831_v58, %v857_v24  ;;  %v859_v29 = vsub.f32 %v821_v56, %v857_v24  ;;  %v866_v16 = vmul.f32 %v858_v26, %v858_v26 }
 0x4e1   : > { %v868_v22 = vmul.f32 %v860_v23, %v860_v23  ;;  %v865_v31 = vsub.f32 %v835_v7, %v857_v24  ;;  %v870_v34 = vmul.f32 %v862_v25, %v862_v25  ;;  %v872_v42 = vmul.f32 %v864_v63, %v864_v63 }
 0x4e2   : > { %v869_v30 = vmul.f32 %v861_v8, %v861_v8  ;;  %v867_v33 = vmul.f32 %v859_v29, %v859_v29  ;;  %v871_v37 = vmul.f32 %v863_v27, %v863_v27  ;;  %v912_v58 = vpop.permute.xlu1 %911 }
 0x4e3   : > { %v874_v61 = vadd.f32 %v868_v22, %v866_v16  ;;  %v873_v48 = vmul.f32 %v865_v31, %v865_v31 }
 0x4e4   : > { %v883_v47 = vadd.f32 %v869_v30, %v867_v33 }
 0x4e5   : > { %v875_v51 = vadd.f32 %v874_v61, %v870_v34 }
 0x4e6   : > { %v884_v53 = vadd.f32 %v883_v47, %v871_v37  ;;  %v916_v0 = vpop.permute.xlu1 %915 }
 0x4e7   : > { %v876_v52 = vadd.f32 %v875_v51, %v872_v42 }
 0x4e8   : > { %v885_v45 = vadd.f32 %v884_v53, %v873_v48 }
 0x4e9   : > { %v877_v55 = vrot.slane %v876_v52, 4 }
 0x4ea   : > { %v886_v62 = vrot.slane %v885_v45, 4  ;;  %v920_v10 = vpop.permute.xlu1 %919 }
 0x4eb   : > { %v878_v49 = vadd.f32 %v877_v55, %v876_v52 }
 0x4ec   : > { %v887_v32 = vadd.f32 %v886_v62, %v885_v45 }
 0x4ed   : > { %v879_v28 = vrot.slane %v878_v49, 2 }
 0x4ee   : > { %v888_v38 = vrot.slane %v887_v32, 2 }
 0x4ef   : > { %v880_v35 = vadd.f32 %v879_v28, %v878_v49 }
 0x4f0   : > { %v889_v41 = vadd.f32 %v888_v38, %v887_v32 }
 0x4f1   : > { %v881_v40 = vrot.slane %v880_v35, 1 }
 0x4f2   : > { %v890_v36 = vrot.slane %v889_v41, 1 }
 0x4f3   : > { %v882_v43 = vadd.f32 %v881_v40, %v880_v35 }
 0x4f4   : > { %v891_v39 = vadd.f32 %v890_v36, %v889_v41 }
 0x4f5   : > { %v892_v44 = vmul.f32 0.03125, %v882_v43 }
 0x4f6   : > { %v893_v50 = vmul.f32 0.03125, %v891_v39 }
 0x4f7   : > { %v894_v56 = vadd.f32 1e-05, %v892_v44 }
 0x4f8   : > { %v895_v57 = vadd.f32 1e-05, %v893_v50 }
 0x4f9   : > { %1193 = vrsqrt.f32 %v894_v56 }
 0x4fa   : > { %1195 = vrsqrt.f32 %v895_v57 }
 0x506   : > { %v1194_v59 = vpop.eup %1193 }
 0x507   : > { %v898_v1 = vmul.f32 %v1194_v59, %v858_v26  ;;  %v900_v2 = vmul.f32 %v1194_v59, %v860_v23  ;;  %v902_v3 = vmul.f32 %v1194_v59, %v862_v25  ;;  %v904_v4 = vmul.f32 %v1194_v59, %v864_v63  ;;  %v1196_v6 = vpop.eup %1195 }
 0x508   : > { %v899_v54 = vmul.f32 %v1196_v6, %v859_v29  ;;  %v901_v5 = vmul.f32 %v1196_v6, %v861_v8  ;;  %v903_v60 = vmul.f32 %v1196_v6, %v863_v27  ;;  %v905_v12 = vmul.f32 %v1196_v6, %v865_v31 }
 0x509   : > { %v922_v7 = vmul.f32 %v908_v46, %v898_v1  ;;  %v924_v9 = vmul.f32 %v912_v58, %v900_v2  ;;  %v926_v11 = vmul.f32 %v916_v0, %v902_v3  ;;  %v928_v13 = vmul.f32 %v920_v10, %v904_v4 }
 0x50a   : > { %v923_v14 = vmul.f32 %v908_v46, %v899_v54  ;;  %v925_v15 = vmul.f32 %v912_v58, %v901_v5  ;;  %v927_v17 = vmul.f32 %v916_v0, %v903_v60  ;;  %v929_v18 = vmul.f32 %v920_v10, %v905_v12 }
 0x50b   : > { %930 = vst [vmem:[%s242_s16] sm:$0xff] %v922_v7  ;;  %932 = vst [vmem:[%s242_s16 + $0x10] sm:$0xff] %v924_v9 }
 0x50c   : > { %934 = vst [vmem:[%s242_s16 + $0x20] sm:$0xff] %v926_v11  ;;  %936 = vst [vmem:[%s242_s16 + $0x30] sm:$0xff] %v928_v13 }
 0x50d   : > { %931 = vst [vmem:[%s242_s16 + $0x8] sm:$0xff] %v923_v14  ;;  %933 = vst [vmem:[%s242_s16 + $0x18] sm:$0xff] %v925_v15 }
 0x50e   : > { %935 = vst [vmem:[%s242_s16 + $0x28] sm:$0xff] %v927_v17  ;;  %937 = vst [vmem:[%s242_s16 + $0x38] sm:$0xff] %v929_v18 }
 0x50f   : > { %1238 = shalt.err (!%p1235_p10)
}
 0x510   : > { %s1239_s28 = scalar_lea.hbm %s1604_s9, 1024  ;;  %s1243_s14 = scalar_lea.hbm %s1652_s5, 2048 }
 0x511   : > { %p1240_p0 = scmp.ne.s32.totalorder %s1604_s9, %s1239_s28  ;;  %p1244_p1 = scmp.lt.s32.totalorder %s1604_s9, %s1652_s5 }
 0x512   : > { %p1245_p3 = scmp.lt.s32.totalorder %s1243_s14, %s1239_s28 }
 0x513   : > { %p1241_p2 = pnand %p1240_p0, %p1661_p12 }
 0x514   : > { %p1246_p6 = por %p1245_p3, %p1244_p1 }
 0x515   : > { %p1242_p9 = pneg %p1241_p2 }
 0x517   : > { %p1247_p11 = pnand %p1246_p6, %p1242_p9 }
 0x519   : > { %1250 = shalt.err (!%p1247_p11)
}
 0x51a   : > { %s1297_s7 = smov 256   ;;  %s1298_s22 = smov 16  }
 0x51b   : > { %1075 = dma.vmem_to_hbm [thread:$0]  (%p1661_p12), %s1599_s8, 1024, %s1604_s9, %s939_s10, %s1297_s7, %s1297_s7, %s1298_s22  }
 0x51c PF: > { %s967_s25 = sand.u32 1, %s1277_s18   ;;  %p1662_p13 = scmp.ne.s32.totalorder %s1658_s6, 0 }
 0x51d   : > { %p1663_p4 = scmp.ge.s32.totalorder %s1289_s21, 2  ;;  %s968_s11 = scalar_lea.sflag [#allocation4], %s967_s25 }
 0x51f   : > { %p1082_p5 = pnand %p1663_p4, %p1662_p13 }
 0x521   : > { %p1083_p7 = pneg %p1082_p5 }
 0x523   : > { %1272 = dma.done.wait (%p1083_p7), %s968_s11, 1024  }
 0x524   : > { %1274 = vsyncadd (%p1083_p7), %s968_s11, 4294966272  ;;  %p18_p8 = scmp.ge.s32.totalorder %s1354_s24, 4   ;;  %s1664_s18 = smov %s1281_s19 }
 0x525   : > { %s1665_s19 = smov %s1285_s20  ;;  %s1666_s20 = smov %s1366_s27 }
 0x526   : > { %s1667_s21 = smov %s1354_s24  ;;  %20 = sbr.rel (!%p18_p8) target bundleno = 5 (0x5), region = 85 }
 0x52b   :  { %973 = vsyncpa [#allocation3], 1 }
 0x52c   :  { %975 = vsyncpa [#allocation3 + $0x1], 1 }
 0x52d   :  { %976 = vsyncpa [#allocation4], 1 }
 0x52e   :  { %978 = vsyncpa [#allocation4 + $0x1], 1 }

</bundles_post_ra>
